<compile_context>
chip_gen: v7x
topology: tpu7x:2x2x1
jax: 0.10.0
libtpu: 0.0.40
codegen_flags: <defaults>
</compile_context>

<pallas_src>
import jax
import jax.numpy as jnp
from jax.experimental import pallas as pl
from jax.experimental.pallas import tpu as pltpu

BN_EPS = 1e-5
LEAKY_SLOPE = 0.1
VMEM_LIMIT_BYTES = 32 * 1024 * 1024   # safe on v5e/v6e (128 MiB) and v7x (64 MiB)


def _conv1x1_fma(w_ref, x):
    """1x1 conv on a lane-dense tile via VPU broadcast-FMA.

    w_ref: (Cout, Cin) VMEM ref; x: (Cin, TM) tile (lanes = pixels).
    Returns (Cout, TM) float32. Unrolled over the tiny channel count instead
    of feeding a degenerate matmul to the MXU.
    """
    w = w_ref[...]
    cin = x.shape[0]
    acc = w[:, 0:1] * x[0:1, :]
    for c in range(1, cin):
        acc = acc + w[:, c:c + 1] * x[c:c + 1, :]
    return acc


def _stats_kernel(w_ref, x_ref, sy_ref, syy_ref):
    """Per-tile partial sums of conv output y and y^2 (for BN batch stats)."""
    x = x_ref[0]                                             # (Cin, TM)
    y = _conv1x1_fma(w_ref, x)                               # (Cout, TM)
    sy_ref[0, 0] = jnp.sum(y, axis=1, keepdims=True)         # (Cout, 1)
    syy_ref[0, 0] = jnp.sum(y * y, axis=1, keepdims=True)    # (Cout, 1)


def _apply_kernel(w_ref, b_ref, x_ref, o_ref):
    """Folded conv+BN (w'x + b') followed by LeakyReLU; lane-dense store."""
    x = x_ref[0]                                             # (Cin, TM)
    z = _conv1x1_fma(w_ref, x) + b_ref[...]                  # (Cout, TM)+(Cout,1)
    o_ref[0] = jnp.where(z > 0, z, LEAKY_SLOPE * z).astype(o_ref.dtype)


def _pick_tile(hw_p, cin, cout, budget_bytes=8 * 1024 * 1024):
    """Largest lane tile dividing hw_p with double-buffered in+out tiles well
    inside the scoped VMEM budget (re-derived for v7x's smaller VMEM)."""
    for t in (4096, 2048, 1024, 512, 256, 128):
        if hw_p % t == 0 and 2 * (cin + cout) * t * 4 <= budget_bytes:
            return t
    return 128  # hw_p is always padded to a multiple of 128


@jax.jit
def conv_upsample(x_nchw, conv_w, gamma, beta):
    """ConvUpsample forward. x_nchw: (N, Cin, H, W) -> (N, Cin//2, 2H, 2W)."""
    N, Cin, H, W = x_nchw.shape
    Cout = conv_w.shape[0]
    HW = H * W

    # Flatten spatial dims (free for NCHW) and pad the pixel/lane axis to a
    # multiple of 128. Zero padding is exact for the stats pass (contributes 0
    # to the sums); padded outputs are sliced off after the apply pass.
    HW_P = ((HW + 127) // 128) * 128
    x3 = x_nchw.reshape(N, Cin, HW)
    if HW_P != HW:
        x3 = jnp.pad(x3, ((0, 0), (0, 0), (0, HW_P - HW)))

    TM = _pick_tile(HW_P, Cin, Cout)
    GT = HW_P // TM
    grid = (N, GT)

    w2d = conv_w.reshape(Cout, Cin).astype(jnp.float32)

    # ---- pass 1: per-tile partial BN statistics (fully parallel grid) ----
    sy_p, syy_p = pl.pallas_call(
        _stats_kernel,
        out_shape=(
            jax.ShapeDtypeStruct((N, GT, Cout, 1), jnp.float32),
            jax.ShapeDtypeStruct((N, GT, Cout, 1), jnp.float32),
        ),
        grid=grid,
        in_specs=[
            pl.BlockSpec((Cout, Cin), lambda n, t: (0, 0)),
            pl.BlockSpec((1, Cin, TM), lambda n, t: (n, 0, t)),
        ],
        out_specs=(
            pl.BlockSpec((1, 1, Cout, 1), lambda n, t: (n, t, 0, 0)),
            pl.BlockSpec((1, 1, Cout, 1), lambda n, t: (n, t, 0, 0)),
        ),
        compiler_params=pltpu.CompilerParams(
            dimension_semantics=("parallel", "parallel"),
            vmem_limit_bytes=VMEM_LIMIT_BYTES,
        ),
    )(w2d, x3)

    # ---- tiny cross-tile reduction + fold BN into the conv ----
    inv_m = jnp.float32(1.0 / (N * HW))             # true pixel count, hoisted
    mean = jnp.sum(sy_p, axis=(0, 1)) * inv_m       # (Cout, 1)
    ex2 = jnp.sum(syy_p, axis=(0, 1)) * inv_m       # (Cout, 1)
    var = jnp.maximum(ex2 - mean * mean, 0.0)       # clamp E[y^2]-mean^2 >= 0
    inv_std = jax.lax.rsqrt(var + BN_EPS)
    scale = gamma.reshape(Cout, 1).astype(jnp.float32) * inv_std
    w_fold = scale * w2d                                               # (Cout, Cin)
    b_fold = beta.reshape(Cout, 1).astype(jnp.float32) - mean * scale  # (Cout, 1)

    # ---- pass 2: folded conv + bias + LeakyReLU (fully parallel grid) ----
    # TODO(synk): if downstream tolerates bf16, store bf16 here to halve HBM
    # write traffic of the 4x-sized upsampled tensor (native on v6e/v7x).
    z3 = pl.pallas_call(
        _apply_kernel,
        out_shape=jax.ShapeDtypeStruct((N, Cout, HW_P), jnp.float32),
        grid=grid,
        in_specs=[
            pl.BlockSpec((Cout, Cin), lambda n, t: (0, 0)),
            pl.BlockSpec((Cout, 1), lambda n, t: (0, 0)),
            pl.BlockSpec((1, Cin, TM), lambda n, t: (n, 0, t)),
        ],
        out_specs=pl.BlockSpec((1, Cout, TM), lambda n, t: (n, 0, t)),
        compiler_params=pltpu.CompilerParams(
            dimension_semantics=("parallel", "parallel"),
            vmem_limit_bytes=VMEM_LIMIT_BYTES,
        ),
    )(w_fold, b_fold, x3)

    # ---- nearest-neighbor 2x upsample: already NCHW, so a single
    # broadcast+reshape pass writes the 4x tensor (no transposes, no repeats).
    # TODO(synk): fusing this duplication into the apply kernel's writeback
    # would save one more read of the 1x tensor, but the lane-level w->2w
    # interleave has no clean Pallas/Mosaic expression today.
    z4 = z3[:, :, :HW].reshape(N, Cout, H, W)
    out = jnp.broadcast_to(
        z4[:, :, :, None, :, None], (N, Cout, H, 2, W, 2)
    ).reshape(N, Cout, 2 * H, 2 * W)
    return out


def _reference(x_nchw, conv_w, gamma, beta):
    """Pure-JAX reference for correctness checking."""
    N, Cin, H, W = x_nchw.shape
    Cout = conv_w.shape[0]
    y = jnp.einsum("nchw,oc->nohw", x_nchw, conv_w.reshape(Cout, Cin))
    mean = jnp.mean(y, axis=(0, 2, 3), keepdims=True)
    var = jnp.mean((y - mean) ** 2, axis=(0, 2, 3), keepdims=True)
    z = (y - mean) / jnp.sqrt(var + BN_EPS)
    z = z * gamma.reshape(1, Cout, 1, 1) + beta.reshape(1, Cout, 1, 1)
    z = jnp.where(z > 0, z, LEAKY_SLOPE * z)
    z = jnp.repeat(jnp.repeat(z, 2, axis=2), 2, axis=3)
    return z


if __name__ == "__main__":
    key = jax.random.PRNGKey(0)
    k_x, k_w, k_g, k_b = jax.random.split(key, 4)

    N, Cin, H, W = 2, 4, 16, 16
    Cout = Cin // 2

    x = jax.random.normal(k_x, (N, Cin, H, W), dtype=jnp.float32)
    # Conv2d(in, in//2, kernel_size=1, bias=False) weight: (Cout, Cin, 1, 1)
    conv_w = jax.random.normal(k_w, (Cout, Cin, 1, 1), dtype=jnp.float32) * 0.5
    gamma = 1.0 + 0.1 * jax.random.normal(k_g, (Cout,), dtype=jnp.float32)
    beta = 0.1 * jax.random.normal(k_b, (Cout,), dtype=jnp.float32)

    out = conv_upsample(x, conv_w, gamma, beta)
    out = jax.block_until_ready(out)

    assert out.shape == (N, Cout, 2 * H, 2 * W), out.shape

    ref = _reference(x, conv_w, gamma, beta)
    max_err = float(jnp.max(jnp.abs(out - ref)))
    assert jnp.allclose(out, ref, atol=1e-4, rtol=1e-4), max_err

    print("KERNEL_OK")
</pallas_src>

<mosaic_0001>
module attributes {stable_mosaic.version = 11 : i64} {
  func.func @_stats_kernel(%arg0: i32, %arg1: i32, %arg2: memref<2x4xf32, #tpu.memory_space<vmem>>, %arg3: memref<1x4x256xf32, #tpu.memory_space<vmem>>, %arg4: memref<1x1x2x1xf32, #tpu.memory_space<vmem>>, %arg5: memref<1x1x2x1xf32, #tpu.memory_space<vmem>>) attributes {dimension_semantics = [#tpu.dimension_semantics<parallel>, #tpu.dimension_semantics<parallel>], iteration_bounds = array<i64: 2, 1>, scalar_prefetch = 0 : i64, scratch_operands = 0 : i64, tpu.core_type = #tpu.core_type<tc>, window_params = [{pipeline_mode = #tpu.pipeline_mode<synchronous>, transform_indices = @transform_0, window_bounds = array<i64: 2, 4>}, {transform_indices = @transform_1, window_bounds = array<i64: 1, 4, 256>}, {transform_indices = @transform_2, window_bounds = array<i64: 1, 1, 2, 1>}, {transform_indices = @transform_3, window_bounds = array<i64: 1, 1, 2, 1>}]} {
    %c0 = arith.constant 0 : index
    %c0_0 = arith.constant 0 : index
    %c0_1 = arith.constant 0 : index
    %0 = vector.load %arg3[%c0, %c0_0, %c0_1] : memref<1x4x256xf32, #tpu.memory_space<vmem>>, vector<1x4x256xf32>
    %1 = vector.shape_cast %0 : vector<1x4x256xf32> to vector<4x256xf32>
    %c0_2 = arith.constant 0 : index
    %c0_3 = arith.constant 0 : index
    %2 = vector.load %arg2[%c0_2, %c0_3] : memref<2x4xf32, #tpu.memory_space<vmem>>, vector<2x4xf32>
    %3 = vector.extract_strided_slice %2 {offsets = [0, 0], sizes = [2, 1], strides = [1, 1]} : vector<2x4xf32> to vector<2x1xf32>
    %4 = vector.extract_strided_slice %1 {offsets = [0, 0], sizes = [1, 256], strides = [1, 1]} : vector<4x256xf32> to vector<1x256xf32>
    %5 = vector.broadcast %3 : vector<2x1xf32> to vector<2x256xf32>
    %6 = vector.broadcast %4 : vector<1x256xf32> to vector<2x256xf32>
    %7 = arith.mulf %5, %6 : vector<2x256xf32>
    %8 = vector.extract_strided_slice %2 {offsets = [0, 1], sizes = [2, 1], strides = [1, 1]} : vector<2x4xf32> to vector<2x1xf32>
    %9 = vector.extract_strided_slice %1 {offsets = [1, 0], sizes = [1, 256], strides = [1, 1]} : vector<4x256xf32> to vector<1x256xf32>
    %10 = vector.broadcast %8 : vector<2x1xf32> to vector<2x256xf32>
    %11 = vector.broadcast %9 : vector<1x256xf32> to vector<2x256xf32>
    %12 = arith.mulf %10, %11 : vector<2x256xf32>
    %13 = arith.addf %7, %12 : vector<2x256xf32>
    %14 = vector.extract_strided_slice %2 {offsets = [0, 2], sizes = [2, 1], strides = [1, 1]} : vector<2x4xf32> to vector<2x1xf32>
    %15 = vector.extract_strided_slice %1 {offsets = [2, 0], sizes = [1, 256], strides = [1, 1]} : vector<4x256xf32> to vector<1x256xf32>
    %16 = vector.broadcast %14 : vector<2x1xf32> to vector<2x256xf32>
    %17 = vector.broadcast %15 : vector<1x256xf32> to vector<2x256xf32>
    %18 = arith.mulf %16, %17 : vector<2x256xf32>
    %19 = arith.addf %13, %18 : vector<2x256xf32>
    %20 = vector.extract_strided_slice %2 {offsets = [0, 3], sizes = [2, 1], strides = [1, 1]} : vector<2x4xf32> to vector<2x1xf32>
    %21 = vector.extract_strided_slice %1 {offsets = [3, 0], sizes = [1, 256], strides = [1, 1]} : vector<4x256xf32> to vector<1x256xf32>
    %22 = vector.broadcast %20 : vector<2x1xf32> to vector<2x256xf32>
    %23 = vector.broadcast %21 : vector<1x256xf32> to vector<2x256xf32>
    %24 = arith.mulf %22, %23 : vector<2x256xf32>
    %25 = arith.addf %19, %24 : vector<2x256xf32>
    %cst = arith.constant dense<0.000000e+00> : vector<2xf32>
    %26 = vector.multi_reduction <add>, %25, %cst [1] : vector<2x256xf32> to vector<2xf32>
    %27 = vector.shape_cast %26 : vector<2xf32> to vector<2x1xf32>
    %c0_4 = arith.constant 0 : index
    %c0_5 = arith.constant 0 : index
    %c0_6 = arith.constant 0 : index
    %c0_7 = arith.constant 0 : index
    %28 = vector.load %arg4[%c0_4, %c0_5, %c0_6, %c0_7] : memref<1x1x2x1xf32, #tpu.memory_space<vmem>>, vector<1x1x2x1xf32>
    %29 = vector.shape_cast %28 : vector<1x1x2x1xf32> to vector<2x1xf32>
    %30 = vector.shape_cast %27 : vector<2x1xf32> to vector<1x1x2x1xf32>
    tpu.vector_store %arg4[%c0_4, %c0_5, %c0_6, %c0_7], %30 {strides = array<i32>} : memref<1x1x2x1xf32, #tpu.memory_space<vmem>>, vector<1x1x2x1xf32>,
    %31 = arith.mulf %25, %25 : vector<2x256xf32>
    %cst_8 = arith.constant dense<0.000000e+00> : vector<2xf32>
    %32 = vector.multi_reduction <add>, %31, %cst_8 [1] : vector<2x256xf32> to vector<2xf32>
    %33 = vector.shape_cast %32 : vector<2xf32> to vector<2x1xf32>
    %c0_9 = arith.constant 0 : index
    %c0_10 = arith.constant 0 : index
    %c0_11 = arith.constant 0 : index
    %c0_12 = arith.constant 0 : index
    %34 = vector.load %arg5[%c0_9, %c0_10, %c0_11, %c0_12] : memref<1x1x2x1xf32, #tpu.memory_space<vmem>>, vector<1x1x2x1xf32>
    %35 = vector.shape_cast %34 : vector<1x1x2x1xf32> to vector<2x1xf32>
    %36 = vector.shape_cast %33 : vector<2x1xf32> to vector<1x1x2x1xf32>
    tpu.vector_store %arg5[%c0_9, %c0_10, %c0_11, %c0_12], %36 {strides = array<i32>} : memref<1x1x2x1xf32, #tpu.memory_space<vmem>>, vector<1x1x2x1xf32>,
    return
  }
  func.func @transform_0(%arg0: i32, %arg1: i32) -> (i32, i32) {
    %c0_i32 = arith.constant 0 : i32
    %c0_i32_0 = arith.constant 0 : i32
    %c0_i32_1 = arith.constant 0 : i32
    return %c0_i32, %c0_i32_0 : i32, i32
  }
  func.func @transform_1(%arg0: i32, %arg1: i32) -> (i32, i32, i32) {
    %c0_i32 = arith.constant 0 : i32
    %c0_i32_0 = arith.constant 0 : i32
    return %arg0, %c0_i32, %arg1 : i32, i32, i32
  }
  func.func @transform_2(%arg0: i32, %arg1: i32) -> (i32, i32, i32, i32) {
    %c0_i32 = arith.constant 0 : i32
    %c0_i32_0 = arith.constant 0 : i32
    %c0_i32_1 = arith.constant 0 : i32
    return %arg0, %arg1, %c0_i32, %c0_i32_0 : i32, i32, i32, i32
  }
  func.func @transform_3(%arg0: i32, %arg1: i32) -> (i32, i32, i32, i32) {
    %c0_i32 = arith.constant 0 : i32
    %c0_i32_0 = arith.constant 0 : i32
    %c0_i32_1 = arith.constant 0 : i32
    return %arg0, %arg1, %c0_i32, %c0_i32_0 : i32, i32, i32, i32
  }
}

module attributes {stable_mosaic.version = 11 : i64} {
  func.func @_apply_kernel(%arg0: i32, %arg1: i32, %arg2: memref<2x4xf32, #tpu.memory_space<vmem>>, %arg3: memref<2x1xf32, #tpu.memory_space<vmem>>, %arg4: memref<1x4x256xf32, #tpu.memory_space<vmem>>, %arg5: memref<1x2x256xf32, #tpu.memory_space<vmem>>) attributes {dimension_semantics = [#tpu.dimension_semantics<parallel>, #tpu.dimension_semantics<parallel>], iteration_bounds = array<i64: 2, 1>, scalar_prefetch = 0 : i64, scratch_operands = 0 : i64, tpu.core_type = #tpu.core_type<tc>, window_params = [{pipeline_mode = #tpu.pipeline_mode<synchronous>, transform_indices = @transform_0, window_bounds = array<i64: 2, 4>}, {pipeline_mode = #tpu.pipeline_mode<synchronous>, transform_indices = @transform_1, window_bounds = array<i64: 2, 1>}, {transform_indices = @transform_2, window_bounds = array<i64: 1, 4, 256>}, {transform_indices = @transform_3, window_bounds = array<i64: 1, 2, 256>}]} {
    %c0 = arith.constant 0 : index
    %c0_0 = arith.constant 0 : index
    %c0_1 = arith.constant 0 : index
    %0 = vector.load %arg4[%c0, %c0_0, %c0_1] : memref<1x4x256xf32, #tpu.memory_space<vmem>>, vector<1x4x256xf32>
    %1 = vector.shape_cast %0 : vector<1x4x256xf32> to vector<4x256xf32>
    %c0_2 = arith.constant 0 : index
    %c0_3 = arith.constant 0 : index
    %2 = vector.load %arg2[%c0_2, %c0_3] : memref<2x4xf32, #tpu.memory_space<vmem>>, vector<2x4xf32>
    %3 = vector.extract_strided_slice %2 {offsets = [0, 0], sizes = [2, 1], strides = [1, 1]} : vector<2x4xf32> to vector<2x1xf32>
    %4 = vector.extract_strided_slice %1 {offsets = [0, 0], sizes = [1, 256], strides = [1, 1]} : vector<4x256xf32> to vector<1x256xf32>
    %5 = vector.broadcast %3 : vector<2x1xf32> to vector<2x256xf32>
    %6 = vector.broadcast %4 : vector<1x256xf32> to vector<2x256xf32>
    %7 = arith.mulf %5, %6 : vector<2x256xf32>
    %8 = vector.extract_strided_slice %2 {offsets = [0, 1], sizes = [2, 1], strides = [1, 1]} : vector<2x4xf32> to vector<2x1xf32>
    %9 = vector.extract_strided_slice %1 {offsets = [1, 0], sizes = [1, 256], strides = [1, 1]} : vector<4x256xf32> to vector<1x256xf32>
    %10 = vector.broadcast %8 : vector<2x1xf32> to vector<2x256xf32>
    %11 = vector.broadcast %9 : vector<1x256xf32> to vector<2x256xf32>
    %12 = arith.mulf %10, %11 : vector<2x256xf32>
    %13 = arith.addf %7, %12 : vector<2x256xf32>
    %14 = vector.extract_strided_slice %2 {offsets = [0, 2], sizes = [2, 1], strides = [1, 1]} : vector<2x4xf32> to vector<2x1xf32>
    %15 = vector.extract_strided_slice %1 {offsets = [2, 0], sizes = [1, 256], strides = [1, 1]} : vector<4x256xf32> to vector<1x256xf32>
    %16 = vector.broadcast %14 : vector<2x1xf32> to vector<2x256xf32>
    %17 = vector.broadcast %15 : vector<1x256xf32> to vector<2x256xf32>
    %18 = arith.mulf %16, %17 : vector<2x256xf32>
    %19 = arith.addf %13, %18 : vector<2x256xf32>
    %20 = vector.extract_strided_slice %2 {offsets = [0, 3], sizes = [2, 1], strides = [1, 1]} : vector<2x4xf32> to vector<2x1xf32>
    %21 = vector.extract_strided_slice %1 {offsets = [3, 0], sizes = [1, 256], strides = [1, 1]} : vector<4x256xf32> to vector<1x256xf32>
    %22 = vector.broadcast %20 : vector<2x1xf32> to vector<2x256xf32>
    %23 = vector.broadcast %21 : vector<1x256xf32> to vector<2x256xf32>
    %24 = arith.mulf %22, %23 : vector<2x256xf32>
    %25 = arith.addf %19, %24 : vector<2x256xf32>
    %c0_4 = arith.constant 0 : index
    %c0_5 = arith.constant 0 : index
    %26 = vector.load %arg3[%c0_4, %c0_5] : memref<2x1xf32, #tpu.memory_space<vmem>>, vector<2x1xf32>
    %27 = vector.broadcast %26 : vector<2x1xf32> to vector<2x256xf32>
    %28 = arith.addf %25, %27 : vector<2x256xf32>
    %cst = arith.constant 0.000000e+00 : f32
    %29 = vector.broadcast %cst : f32 to vector<2x256xf32>
    %30 = arith.cmpf ogt, %28, %29 : vector<2x256xf32>
    %cst_6 = arith.constant 1.000000e-01 : f32
    %31 = vector.broadcast %cst_6 : f32 to vector<2x256xf32>
    %32 = arith.mulf %31, %28 : vector<2x256xf32>
    %33 = arith.select %30, %28, %32 : vector<2x256xi1>, vector<2x256xf32>
    %c0_7 = arith.constant 0 : index
    %c0_8 = arith.constant 0 : index
    %c0_9 = arith.constant 0 : index
    %34 = vector.load %arg5[%c0_7, %c0_8, %c0_9] : memref<1x2x256xf32, #tpu.memory_space<vmem>>, vector<1x2x256xf32>
    %35 = vector.shape_cast %34 : vector<1x2x256xf32> to vector<2x256xf32>
    %36 = vector.shape_cast %33 : vector<2x256xf32> to vector<1x2x256xf32>
    tpu.vector_store %arg5[%c0_7, %c0_8, %c0_9], %36 {strides = array<i32>} : memref<1x2x256xf32, #tpu.memory_space<vmem>>, vector<1x2x256xf32>,
    return
  }
  func.func @transform_0(%arg0: i32, %arg1: i32) -> (i32, i32) {
    %c0_i32 = arith.constant 0 : i32
    %c0_i32_0 = arith.constant 0 : i32
    %c0_i32_1 = arith.constant 0 : i32
    return %c0_i32, %c0_i32_0 : i32, i32
  }
  func.func @transform_1(%arg0: i32, %arg1: i32) -> (i32, i32) {
    %c0_i32 = arith.constant 0 : i32
    %c0_i32_0 = arith.constant 0 : i32
    %c0_i32_1 = arith.constant 0 : i32
    return %c0_i32, %c0_i32_0 : i32, i32
  }
  func.func @transform_2(%arg0: i32, %arg1: i32) -> (i32, i32, i32) {
    %c0_i32 = arith.constant 0 : i32
    %c0_i32_0 = arith.constant 0 : i32
    return %arg0, %c0_i32, %arg1 : i32, i32, i32
  }
  func.func @transform_3(%arg0: i32, %arg1: i32) -> (i32, i32, i32) {
    %c0_i32 = arith.constant 0 : i32
    %c0_i32_0 = arith.constant 0 : i32
    return %arg0, %c0_i32, %arg1 : i32, i32, i32
  }
}

</mosaic_0001>

<bundles_post_ra>
// kernel: conv_upsample.2
= control target key start
LH: loop header
LB: loop body
LE: loop exit
PB: predicated region body
PF: predicated region fallthrough
CT: control target
= control target key end

     0   :  { %s557_s12 = smov 0   ;;  %s559_s13 = smov 0   ;;  %s600_s0 = inlined_call_operand.vmem [shape: f32[2,4], index: 0, kind: input, shape index: {}]   ;;  %s601_s1 = inlined_call_operand.vmem [shape: f32[2,4,256], index: 1, kind: input, shape index: {}]   ;;  %s602_s2 = inlined_call_operand.vmem [shape: f32[2,1,2,1], index: 2, kind: output, shape index: {0}]   ;;  %s603_s3 = inlined_call_operand.vmem [shape: f32[2,1,2,1], index: 3, kind: output, shape index: {1}]  }
   0x1   :  { %s561_s14 = smov 0  }
   0x2 LB: > { %s26_s15 = sadd.s32 1, %s527_s13  ;;  %p468_p0 = scmp.ge.s32.totalorder %s531_s14, 1  ;;  %s531_s14 = sphi %s561_s14, %s14_s14   ;;  %s527_s13 = sphi %s559_s13, %s605_s13   ;;  %s523_s12 = sphi %s557_s12, %s604_s12  }
   0x3   : > { %p28_p1 = scmp.ge.s32.totalorder %s26_s15, 2  ;;  %p163_p2 = scmp.lt.s32.totalorder %s531_s14, 3 }
   0x5   : > { %s607_s15 = smov (%p28_p1, %s26_s15), 0  ;;  %p164_p3 = pnand %p468_p0, %p163_p2 }
   0x6   : > { %v225_v0 = vld [vmem:[%s600_s0] sm:$0x3] (!%p164_p3)  ;;  %v533_v1 = vmov (!%p164_p3), 0   ;;  %v534_v2 = vmov (!%p164_p3), 2   ;;  %v535_v3 = vmov (!%p164_p3), 1   ;;  %v536_v4 = vmov (!%p164_p3), 3  }
   0x7   : > { %167 = sbr.rel (%p164_p3) target bundleno = 297 (0x129), region = 28  ;;  %504 = vset.pattern.permute.xlu0 (!%p164_p3), %v533_v1  ;;  %506 = vset.pattern.permute.xlu1 (!%p164_p3), %v534_v2  ;;  %p201_p4 = scmp.lt.s32.totalorder (!%p164_p3), %s523_s12, 1  ;;  %v232_v5 = vlaneseq (!%p164_p3)  ;;  %vm330_vm0 = vcmask (!%p164_p3), 1041408   ;;  %vm336_vm1 = vcmask (!%p164_p3), 1024  }
   0x8   : > { %228 = vperm.xlu0 (!%p164_p3), %504, %v225_v0   ;;  %279 = vperm.xlu1 (!%p164_p3), %506, %v225_v0  }
   0x9   : > { %v233_v6 = vshrl.u32 (!%p164_p3), %v232_v5, 7 }
   0xb   : > { %v234_v7 = vsub.s32 (!%p164_p3), 0, %v233_v6  ;;  %v238_v8 = vsub.s32 (!%p164_p3), 4, %v233_v6  ;;  %v258_v9 = vsub.s32 (!%p164_p3), 1, %v233_v6  ;;  %v262_v10 = vsub.s32 (!%p164_p3), 5, %v233_v6 }
   0xc   : > { %505 = vset.pattern.permute.xlu0 (!%p164_p3), %v535_v3  ;;  %507 = vset.pattern.permute.xlu1 (!%p164_p3), %v536_v4  ;;  %v284_v12 = vsub.s32 (!%p164_p3), 2, %v233_v6  ;;  %v288_v13 = vsub.s32 (!%p164_p3), 6, %v233_v6  ;;  %v310_v14 = vsub.s32 (!%p164_p3), 3, %v233_v6  ;;  %v314_v15 = vsub.s32 (!%p164_p3), 7, %v233_v6 }
   0xd   : > { %253 = vperm.xlu0 (!%p164_p3), %505, %v225_v0   ;;  %305 = vperm.xlu1 (!%p164_p3), %507, %v225_v0  }
   0xe   : > { %s609_s12 = smov (!%p201_p4, %s523_s12), 1 }
   0xf   : > { %s475_s18 = sshll.u32 %s609_s12, 3  ;;  %s471_s22 = sshll.u32 %s609_s12, 1 }
  0x10   : > { %s208_s21 = scalar_lea.vmem %s601_s1, %s475_s18  ;;  %s216_s25 = scalar_lea.vmem %s602_s2, %s471_s22 }
  0x11   : > { %508 = vset.pattern.permute.xlu0 %v536_v4  ;;  %v224_v11 = vld [vmem:[%s208_s21] sm:$0xff]  ;;  %s223_s28 = scalar_lea.vmem %s603_s3, %s471_s22 }
  0x12   : > { %v235_v16 = vrot.slane %v224_v11, %v234_v7  ;;  %v239_v17 = vrot.slane %v224_v11, %v238_v8  ;;  %v259_v18 = vrot.slane %v224_v11, %v258_v9  ;;  %v263_v19 = vrot.slane %v224_v11, %v262_v10 }
  0x13   : > { %v285_v20 = vrot.slane %v224_v11, %v284_v12  ;;  %v289_v21 = vrot.slane %v224_v11, %v288_v13  ;;  %v311_v24 = vrot.slane %v224_v11, %v310_v14  ;;  %v315_v25 = vrot.slane %v224_v11, %v314_v15 }
  0x14   : > { %v245_v26 = vrot.slane %v235_v16, %v234_v7  ;;  %v249_v27 = vrot.slane %v239_v17, %v234_v7  ;;  %v269_v28 = vrot.slane %v259_v18, %v258_v9  ;;  %v273_v29 = vrot.slane %v263_v19, %v258_v9 }
  0x15   : > { %v295_v30 = vrot.slane %v285_v20, %v284_v12  ;;  %v299_v31 = vrot.slane %v289_v21, %v284_v12  ;;  %v321_v32 = vrot.slane %v311_v24, %v310_v14  ;;  %v325_v33 = vrot.slane %v315_v25, %v310_v14 }
  0x87   : > { %v229_v22 = vpop.permute.xlu0 %228  ;;  %v280_v23 = vpop.permute.xlu1 %279 }
  0x88   : > { %v250_v36 = vmul.f32 %v245_v26, %v229_v22  ;;  %v251_v37 = vmul.f32 %v249_v27, %v229_v22  ;;  %v300_v40 = vmul.f32 %v295_v30, %v280_v23  ;;  %v301_v41 = vmul.f32 %v299_v31, %v280_v23 }
  0x8c   : > { %v254_v34 = vpop.permute.xlu0 %253  ;;  %v306_v35 = vpop.permute.xlu1 %305 }
  0x8d   : > { %v274_v38 = vmul.f32 %v269_v28, %v254_v34  ;;  %v275_v39 = vmul.f32 %v273_v29, %v254_v34  ;;  %v326_v44 = vmul.f32 %v321_v32, %v306_v35  ;;  %v327_v45 = vmul.f32 %v325_v33, %v306_v35 }
  0x8f   : > { %v276_v42 = vadd.f32 %v274_v38, %v250_v36  ;;  %v277_v43 = vadd.f32 %v275_v39, %v251_v37 }
  0x91   : > { %v302_v46 = vadd.f32 %v300_v40, %v276_v42  ;;  %v303_v47 = vadd.f32 %v301_v41, %v277_v43 }
  0x93   : > { %v328_v48 = vadd.f32 %v326_v44, %v302_v46  ;;  %v329_v49 = vadd.f32 %v327_v45, %v303_v47 }
  0x95   : > { %v331_v50 = vsel %vm330_vm0, %v328_v48, 0.0  ;;  %v332_v51 = vsel %vm330_vm0, %v329_v49, 0.0  ;;  %v338_v52 = vmul.f32 %v328_v48, %v328_v48  ;;  %v339_v53 = vmul.f32 %v329_v49, %v329_v49 }
  0x96   : > { %v333_v54 = vadd.f32 %v332_v51, %v331_v50 }
  0x97   : > { %v340_v55 = vsel %vm330_vm0, %v338_v52, 0.0  ;;  %v341_v56 = vsel %vm330_vm0, %v339_v53, 0.0 }
  0x98   : > { %334 = vadd.xlane.f32.xlu1 %v333_v54  ;;  %v342_v57 = vadd.f32 %v341_v56, %v340_v55 }
  0x9a   : > { %343 = vadd.xlane.f32.xlu0 %v342_v57 }
 0x125   : > { %v335_v58 = vpop.xlane.xlu1 %334 }
 0x126   : > { %337 = vst.msk [vmem:[%s216_s25] sm:$0x3] %vm336_vm1, %v335_v58 }
 0x127   : > { %v344_v59 = vpop.xlane.xlu0 %343 }
 0x128   : > { %345 = vst.msk [vmem:[%s223_s28] sm:$0x3] %vm336_vm1, %v344_v59 }
 0x129 PF: > { %s14_s14 = sadd.s32 1, %s531_s14   ;;  %s604_s12 = smov %s527_s13 }
 0x12a   : > { %p11_p5 = scmp.ge.s32.totalorder %s14_s14, 4   ;;  %s605_s13 = smov %s607_s15 }
 0x12c   :  { %13 = sbr.rel (!%p11_p5) target bundleno = 2 (0x2), region = 70 }

// kernel: conv_upsample.3
= control target key start
LH: loop header
LB: loop body
LE: loop exit
PB: predicated region body
PF: predicated region fallthrough
CT: control target
= control target key end

     0   :  { %s525_s12 = smov 0   ;;  %s527_s13 = smov 0   ;;  %s568_s0 = inlined_call_operand.vmem [shape: f32[2,4], index: 0, kind: input, shape index: {}]   ;;  %s569_s1 = inlined_call_operand.vmem [shape: f32[2,1], index: 1, kind: input, shape index: {}]   ;;  %s570_s2 = inlined_call_operand.vmem [shape: f32[2,4,256], index: 2, kind: input, shape index: {}]   ;;  %s571_s3 = inlined_call_operand.vmem [shape: f32[2,2,256], index: 3, kind: output, shape index: {}]  }
   0x1   :  { %s529_s14 = smov 0  }
   0x2 LB: > { %s25_s15 = sadd.s32 1, %s495_s13  ;;  %p433_p0 = scmp.ge.s32.totalorder %s499_s14, 1  ;;  %s499_s14 = sphi %s529_s14, %s13_s14   ;;  %s495_s13 = sphi %s527_s13, %s573_s13   ;;  %s491_s12 = sphi %s525_s12, %s572_s12  }
   0x3   : > { %p27_p1 = scmp.ge.s32.totalorder %s25_s15, 2  ;;  %p158_p2 = scmp.lt.s32.totalorder %s499_s14, 3 }
   0x5   : > { %s575_s15 = smov (%p27_p1, %s25_s15), 0  ;;  %p159_p3 = pnand %p433_p0, %p158_p2 }
   0x6   : > { %v211_v0 = vld [vmem:[%s568_s0] sm:$0x3] (!%p159_p3)  ;;  %v501_v1 = vmov (!%p159_p3), 0   ;;  %v502_v2 = vmov (!%p159_p3), 2   ;;  %v503_v3 = vmov (!%p159_p3), 1   ;;  %v504_v4 = vmov (!%p159_p3), 3  }
   0x7   : > { %162 = sbr.rel (%p159_p3) target bundleno = 157 (0x9d), region = 32  ;;  %471 = vset.pattern.permute.xlu0 (!%p159_p3), %v501_v1  ;;  %473 = vset.pattern.permute.xlu1 (!%p159_p3), %v502_v2  ;;  %v316_v5 = vld [vmem:[%s569_s1] sm:$0x3] (!%p159_p3)  ;;  %p191_p4 = scmp.lt.s32.totalorder (!%p159_p3), %s491_s12, 1  ;;  %v218_v6 = vlaneseq (!%p159_p3) }
   0x8   : > { %214 = vperm.xlu0 (!%p159_p3), %471, %v211_v0   ;;  %265 = vperm.xlu1 (!%p159_p3), %473, %v211_v0  }
   0x9   : > { %v219_v7 = vshrl.u32 (!%p159_p3), %v218_v6, 7 }
   0xb   : > { %v220_v8 = vsub.s32 (!%p159_p3), 0, %v219_v7  ;;  %v224_v9 = vsub.s32 (!%p159_p3), 4, %v219_v7  ;;  %v244_v10 = vsub.s32 (!%p159_p3), 1, %v219_v7  ;;  %v248_v11 = vsub.s32 (!%p159_p3), 5, %v219_v7 }
   0xc   : > { %472 = vset.pattern.permute.xlu0 (!%p159_p3), %v503_v3  ;;  %474 = vset.pattern.permute.xlu1 (!%p159_p3), %v504_v4  ;;  %v270_v13 = vsub.s32 (!%p159_p3), 2, %v219_v7  ;;  %v274_v14 = vsub.s32 (!%p159_p3), 6, %v219_v7  ;;  %v296_v15 = vsub.s32 (!%p159_p3), 3, %v219_v7  ;;  %v300_v16 = vsub.s32 (!%p159_p3), 7, %v219_v7 }
   0xd   : > { %239 = vperm.xlu0 (!%p159_p3), %472, %v211_v0   ;;  %291 = vperm.xlu1 (!%p159_p3), %474, %v211_v0  }
   0xe   : > { %s577_s12 = smov (!%p191_p4, %s491_s12), 1 }
   0xf   : > { %s441_s20 = sshll.u32 %s577_s12, 3  ;;  %s442_s24 = sshll.u32 %s577_s12, 2 }
  0x10   : > { %s198_s23 = scalar_lea.vmem %s570_s2, %s441_s20  ;;  %s208_s27 = scalar_lea.vmem %s571_s3, %s442_s24 }
  0x11   : > { %475 = vset.pattern.permute.xlu1 %v501_v1  ;;  %476 = vset.pattern.permute.xlu0 %v501_v1  ;;  %v210_v12 = vld [vmem:[%s198_s23] sm:$0xff] }
  0x12   : > { %319 = vperm.xlu1 %475, %v316_v5   ;;  %v221_v17 = vrot.slane %v210_v12, %v220_v8  ;;  %v225_v18 = vrot.slane %v210_v12, %v224_v9  ;;  %v245_v19 = vrot.slane %v210_v12, %v244_v10  ;;  %v249_v20 = vrot.slane %v210_v12, %v248_v11 }
  0x13   : > { %v271_v21 = vrot.slane %v210_v12, %v270_v13  ;;  %v275_v22 = vrot.slane %v210_v12, %v274_v14  ;;  %v297_v25 = vrot.slane %v210_v12, %v296_v15  ;;  %v301_v26 = vrot.slane %v210_v12, %v300_v16 }
  0x14   : > { %v231_v27 = vrot.slane %v221_v17, %v220_v8  ;;  %v235_v28 = vrot.slane %v225_v18, %v220_v8  ;;  %v255_v29 = vrot.slane %v245_v19, %v244_v10  ;;  %v259_v30 = vrot.slane %v249_v20, %v244_v10 }
  0x15   : > { %v281_v31 = vrot.slane %v271_v21, %v270_v13  ;;  %v285_v32 = vrot.slane %v275_v22, %v270_v13  ;;  %v307_v33 = vrot.slane %v297_v25, %v296_v15  ;;  %v311_v34 = vrot.slane %v301_v26, %v296_v15 }
  0x87   : > { %v215_v23 = vpop.permute.xlu0 %214  ;;  %v266_v24 = vpop.permute.xlu1 %265 }
  0x88   : > { %v236_v37 = vmul.f32 %v231_v27, %v215_v23  ;;  %v237_v38 = vmul.f32 %v235_v28, %v215_v23  ;;  %v286_v41 = vmul.f32 %v281_v31, %v266_v24  ;;  %v287_v42 = vmul.f32 %v285_v32, %v266_v24 }
  0x8c   : > { %v240_v35 = vpop.permute.xlu0 %239  ;;  %v292_v36 = vpop.permute.xlu1 %291 }
  0x8d   : > { %v260_v39 = vmul.f32 %v255_v29, %v240_v35  ;;  %v261_v40 = vmul.f32 %v259_v30, %v240_v35  ;;  %v312_v45 = vmul.f32 %v307_v33, %v292_v36  ;;  %v313_v46 = vmul.f32 %v311_v34, %v292_v36 }
  0x8f   : > { %v262_v43 = vadd.f32 %v260_v39, %v236_v37  ;;  %v263_v44 = vadd.f32 %v261_v40, %v237_v38 }
  0x91   : > { %v288_v47 = vadd.f32 %v286_v41, %v262_v43  ;;  %v289_v48 = vadd.f32 %v287_v42, %v263_v44  ;;  %v320_v49 = vpop.permute.xlu1 %319 }
  0x93   : > { %v314_v50 = vadd.f32 %v312_v45, %v288_v47  ;;  %v315_v51 = vadd.f32 %v313_v46, %v289_v48 }
  0x95   : > { %v322_v52 = vadd.f32 %v320_v49, %v314_v50  ;;  %v323_v53 = vadd.f32 %v320_v49, %v315_v51 }
  0x97   : > { %vm324_vm0 = vcmp.gt.f32.partialorder %v322_v52, 0.0  ;;  %vm325_vm1 = vcmp.gt.f32.partialorder %v323_v53, 0.0  ;;  %v326_v54 = vmul.f32 0.1, %v322_v52  ;;  %v327_v55 = vmul.f32 0.1, %v323_v53 }
  0x99   : > { %v328_v56 = vsel %vm324_vm0, %v322_v52, %v326_v54  ;;  %v329_v57 = vsel %vm325_vm1, %v323_v53, %v327_v55 }
  0x9a   : > { %v332_v58 = vcombine.low %v328_v56, %v329_v57 }
  0x9c   : > { %438 = vst.sshfl [vmem:[%s208_s27] sm:$0x33 pattern:$0x76325410] %v332_v58 }
  0x9d PF: > { %s13_s14 = sadd.s32 1, %s499_s14   ;;  %s572_s12 = smov %s495_s13 }
  0x9e   : > { %p10_p5 = scmp.ge.s32.totalorder %s13_s14, 4   ;;  %s573_s13 = smov %s575_s15 }
  0xa0   :  { %12 = sbr.rel (!%p10_p5) target bundleno = 2 (0x2), region = 62 }

</bundles_post_ra>
